<compile_context>
chip_gen: v6e
topology: v6e:2x2x1
jax: 0.10.0
libtpu: 0.0.40
codegen_flags: <defaults>
</compile_context>

<pallas_src>
import math

import jax
import jax.numpy as jnp
from jax import lax
from jax.experimental import pallas as pl
from jax.experimental.pallas import tpu as pltpu

IN_SHAPE = 2        # in_shape
OUT_SHAPE = 2       # out_shape
CHANNELS = 128      # channels
# num_layers = 2 (hard-wired: w_l1 / w_l2 below)

PACK_W = 8          # packed [x | cond | zeros] slab width (sublane-aligned)
COND_COL = IN_SHAPE  # cond sits right after the flattened inputs

# v5e/v6e (128 MiB VMEM): tile_b=2048-4096 plus a raised vmem_limit_bytes pays
# off (amortizes ~0.35us/step grid overhead); v7x (64 MiB): keep <=2048 and
# rely on >=2 grid steps for megacore instead.  1024 is safe everywhere.
DEFAULT_TILE_B = 1024

_INV_SQRT2 = 0.7071067811865475
_SQRT_2_OVER_PI = 0.7978845608028654


def _gelu_exact(x):
    # PyTorch nn.GELU() default (approximate='none'): VPU erf polynomial.
    return 0.5 * x * (1.0 + lax.erf(x * _INV_SQRT2))


def _gelu_tanh(x):
    # PyTorch nn.GELU(approximate='tanh'): the tanh issues on the EUP slot,
    # keeping the VALU free for the sin polynomial / elementwise work.
    inner = _SQRT_2_OVER_PI * (x + 0.044715 * (x * x * x))
    return 0.5 * x * (1.0 + jnp.tanh(inner))


def _round_up(x, m):
    return (x + m - 1) // m * m


def fourier_mlp_kernel(
    cx_ref,      # (TB, 8)  f32: [x0, x1, cond, 0, ...]
    cp_ref,      # (2, 2C)  f32: row0 = [coeff, coeff], row1 = [phase, phase+pi/2]
    w_t1_ref,    # (2C, C)  timestep_embed[0].weight.T
    w_t2_ref,    # (C, C)   timestep_embed[2].weight.T
    w_in8_ref,   # (8, C)   input_embed.weight.T zero-padded to the packed slab
    w_l1_ref,    # (C, C)   layers[1][0].weight.T
    w_l2_ref,    # (C, C)   layers[2][0].weight.T
    w_out_ref,   # (C, OUT) layers[-1].weight.T
    bias_ref,    # (5, C)   rows: b_t1, b_t2 + b_in, b_l1, b_l2, pad(b_out)
    out_ref,     # (TB, OUT)
    *, gelu, mxu_dtype,
):
    f32 = jnp.float32
    cx = cx_ref[...]
    cond = cx[:, COND_COL:COND_COL + 1]                      # (TB, 1)

    # Fused sin/cos: lanes [0, C) hold sin(arg), lanes [C, 2C) hold cos(arg)
    # because phase row [C:] = phase + pi/2.  One VPU sin over 2C lanes.
    trig = jnp.sin(cp_ref[0:1, :] * cond + cp_ref[1:2, :])   # (TB, 2C) f32

    b_t1 = bias_ref[0:1, :]
    b_t2in = bias_ref[1:2, :]                                # b_t2 + b_in folded
    b_l1 = bias_ref[2:3, :]
    b_l2 = bias_ref[3:4, :]
    b_out = bias_ref[4:5, 0:OUT_SHAPE]

    def dot(a, w_ref):
        # bf16 (or f32) operands, f32 accumulation on the MXU.
        return jnp.dot(a.astype(mxu_dtype), w_ref[...],
                       preferred_element_type=f32)

    # timestep_embed: Linear(2C -> C) as one K=2C MXU pass, GELU, Linear(C -> C)
    # with input_embed folded onto the MXU as a second tiny K=8 pass whose bias
    # was pre-added into b_t2in.  Then layers[0] GELU on (embed_ins + embed_cond).
    h = gelu(dot(trig, w_t1_ref) + b_t1)
    z = gelu(dot(h, w_t2_ref) + dot(cx, w_in8_ref) + b_t2in)

    # layers: [Linear(C, C), GELU] x 2, Linear(C, OUT).
    z = gelu(dot(z, w_l1_ref) + b_l1)
    z = gelu(dot(z, w_l2_ref) + b_l2)
    out_ref[...] = (dot(z, w_out_ref) + b_out).astype(out_ref.dtype)


def init_params(key, zero_init=True):
    C, IN, OUT = CHANNELS, IN_SHAPE, OUT_SHAPE
    ks = jax.random.split(key, 13)
    scale = 0.05

    def lin(kw, kb, fan_in, fan_out):
        # Weights stored pre-transposed as (in_features, out_features); a PyTorch
        # checkpoint's Linear.weight would be transposed when importing.
        w = scale * jax.random.normal(kw, (fan_in, fan_out), jnp.float32)
        b = scale * jax.random.normal(kb, (1, fan_out), jnp.float32)
        return w, b

    p = {}
    p["coeff"] = jnp.linspace(0.1, 100.0, C, dtype=jnp.float32).reshape(1, C)
    p["phase"] = jax.random.normal(ks[0], (1, C), jnp.float32)
    p["w_in"], p["b_in"] = lin(ks[1], ks[2], IN, C)
    # timestep_embed[0]: rows 0..C-1 act on the sin half, rows C..2C-1 on cos.
    p["w_t1"], p["b_t1"] = lin(ks[3], ks[4], 2 * C, C)
    p["w_t2"], p["b_t2"] = lin(ks[5], ks[6], C, C)
    p["w_l1"], p["b_l1"] = lin(ks[7], ks[8], C, C)
    p["w_l2"], p["b_l2"] = lin(ks[9], ks[10], C, C)
    if zero_init:
        p["w_out"] = jnp.zeros((C, OUT), jnp.float32)
        p["b_out"] = jnp.zeros((1, OUT), jnp.float32)
    else:
        p["w_out"], p["b_out"] = lin(ks[11], ks[12], C, OUT)
    return p


def _choose_batch_tiling(batch, tile_b):
    """Divisor-aware batch tiling.

    Bounds padding to <8 rows per tile (vs. up to a whole tile with
    round_up(B, tile_b)) and forces >=2 (even) grid steps for mid/large
    batches so dimension_semantics=("parallel",) actually gives both v7x
    TensorCores work (no-op on single-TC v5e/v6e).
    """
    n = max(1, math.ceil(batch / tile_b))
    if batch > 256:
        n = max(n, 2)
    if n > 1 and n % 2 == 1:
        n += 1
    tb = _round_up(math.ceil(batch / n), 8)
    return tb, n * tb, n


def fourier_mlp_forward(cond, inputs, params, *, tile_b=DEFAULT_TILE_B,
                        approximate_gelu=True, mxu_dtype=jnp.bfloat16,
                        vmem_limit_bytes=None):
    C, IN, OUT = CHANNELS, IN_SHAPE, OUT_SHAPE
    B = inputs.shape[0]

    # cond.view(-1, 1).expand((B, 1)); inputs.view(B, -1); packed into one slab:
    # columns [0, IN) = flattened inputs, column IN = cond, rest zero.
    cond2d = jnp.broadcast_to(cond.reshape(-1, 1).astype(jnp.float32), (B, 1))
    x2d = inputs.reshape(B, -1).astype(jnp.float32)
    cx = jnp.concatenate(
        [x2d, cond2d, jnp.zeros((B, PACK_W - IN - 1), jnp.float32)], axis=-1)

    tb, bp, nsteps = _choose_batch_tiling(B, tile_b)
    if bp != B:
        cx = jnp.pad(cx, ((0, bp - B), (0, 0)))   # zero rows -> finite garbage

    # cos(x) == sin(x + pi/2): fold the [sin, cos] concat into one (1, 2C)
    # coeff/phase pair so the kernel runs a single sin and one K=2C matmul.
    half_pi = jnp.float32(0.5 * math.pi)
    coeff_full = jnp.concatenate([params["coeff"], params["coeff"]], axis=-1)
    phase_full = jnp.concatenate(
        [params["phase"], params["phase"] + half_pi], axis=-1)
    coeff_phase = jnp.concatenate([coeff_full, phase_full], axis=0)   # (2, 2C)

    wd = mxu_dtype
    w_t1 = params["w_t1"].astype(wd)
    w_t2 = params["w_t2"].astype(wd)
    # input_embed weight padded to the packed slab: rows IN..7 (cond + padding
    # columns) are zero so they contribute nothing.
    w_in8 = jnp.pad(params["w_in"], ((0, PACK_W - IN), (0, 0))).astype(wd)
    w_l1 = params["w_l1"].astype(wd)
    w_l2 = params["w_l2"].astype(wd)
    w_out = params["w_out"].astype(wd)

    b_out_pad = jnp.pad(params["b_out"], ((0, 0), (0, C - OUT)))
    biases = jnp.concatenate(
        [params["b_t1"], params["b_t2"] + params["b_in"],
         params["b_l1"], params["b_l2"], b_out_pad], axis=0)          # (5, C)

    def batched(ncol):
        return pl.BlockSpec((tb, ncol), lambda i: (i, 0))

    def resident(shape):
        # Full-array block with a constant index -> stays VMEM-resident across
        # the whole grid.
        # TODO(synk): pipeline_mode=pl.Buffered(1) would also drop the
        # (pointless) second buffer for these constant blocks.
        return pl.BlockSpec(shape, lambda i: (0, 0))

    in_specs = [
        batched(PACK_W),
        resident((2, 2 * C)),
        resident((2 * C, C)),
        resident((C, C)),
        resident((PACK_W, C)),
        resident((C, C)),
        resident((C, C)),
        resident((C, OUT)),
        resident((5, C)),
    ]
    args = (cx, coeff_phase, w_t1, w_t2, w_in8, w_l1, w_l2, w_out, biases)

    gelu = _gelu_tanh if approximate_gelu else _gelu_exact

    def kernel(*refs):
        return fourier_mlp_kernel(*refs, gelu=gelu, mxu_dtype=mxu_dtype)

    # Advisory cost hint so XLA schedules around the call sensibly.
    flops = bp * 2 * (2 * C * C + C * C + PACK_W * C + C * C + C * C + C * OUT)
    transcendentals = bp * (2 * C + 4 * C)   # sin over 2C lanes + four GELUs on C
    wbytes = sum(int(a.size) * a.dtype.itemsize for a in args[1:])
    bytes_accessed = wbytes + 4 * bp * (PACK_W + OUT)

    comp_kwargs = dict(dimension_semantics=("parallel",))  # megacore sharding
    if vmem_limit_bytes is not None:
        comp_kwargs["vmem_limit_bytes"] = vmem_limit_bytes

    out = pl.pallas_call(
        kernel,
        out_shape=jax.ShapeDtypeStruct((bp, OUT), jnp.float32),
        grid=(nsteps,),
        in_specs=in_specs,
        out_specs=batched(OUT),
        compiler_params=pltpu.CompilerParams(**comp_kwargs),
        cost_estimate=pl.CostEstimate(
            flops=int(flops), transcendentals=int(transcendentals),
            bytes_accessed=int(bytes_accessed)),
    )(*args)

    return out[:B].reshape(-1, OUT_SHAPE)   # out.view(-1, *out_shape)


def ref_forward(cond, inputs, p):
    # Pure-JAX reference mirroring the PyTorch forward exactly (erf GELU, f32).
    B = inputs.shape[0]
    c = jnp.broadcast_to(cond.reshape(-1, 1).astype(jnp.float32), (B, 1))
    arg = p["coeff"] * c + p["phase"]
    cat = jnp.concatenate([jnp.sin(arg), jnp.cos(arg)], axis=-1)  # 'd b w -> b (d w)'
    h = jax.nn.gelu(cat @ p["w_t1"] + p["b_t1"], approximate=False)
    embed_cond = h @ p["w_t2"] + p["b_t2"]
    embed_ins = inputs.reshape(B, -1) @ p["w_in"] + p["b_in"]
    z = jax.nn.gelu(embed_ins + embed_cond, approximate=False)
    z = jax.nn.gelu(z @ p["w_l1"] + p["b_l1"], approximate=False)
    z = jax.nn.gelu(z @ p["w_l2"] + p["b_l2"], approximate=False)
    return (z @ p["w_out"] + p["b_out"]).reshape(-1, OUT_SHAPE)


if __name__ == "__main__":
    key = jax.random.PRNGKey(0)
    k_params, k_cond, k_x = jax.random.split(key, 3)

    # zero_init=False so the output head is non-trivial and checks are meaningful.
    params = init_params(k_params, zero_init=False)

    B = 8
    cond = jax.random.uniform(k_cond, (B,), jnp.float32)
    inputs = jax.random.normal(k_x, (B, IN_SHAPE), jnp.float32)
    ref = ref_forward(cond, inputs, params)

    # (a) Faithful config (exact erf GELU, f32 MXU operands): tight check
    #     against the PyTorch-mirror reference.
    out_exact = jax.block_until_ready(
        fourier_mlp_forward(cond, inputs, params,
                            approximate_gelu=False, mxu_dtype=jnp.float32))
    assert out_exact.shape == (B, OUT_SHAPE)
    err = float(jnp.max(jnp.abs(out_exact - ref)))
    assert err < 5e-4, f"exact-config mismatch (B={B}): max abs err {err}"

    # (b) Fast default config (tanh GELU on the EUP + bf16 MXU operands): the
    #     perf-review numerics change, validated at a looser tolerance.
    out_fast = jax.block_until_ready(fourier_mlp_forward(cond, inputs, params))
    assert out_fast.shape == (B, OUT_SHAPE)
    err = float(jnp.max(jnp.abs(out_fast - ref)))
    assert err < 3e-2, f"fast-config mismatch (B={B}): max abs err {err}"

    # (c) Batch needing tail padding (exercises the divisor-aware pad/slice path).
    B2 = 5
    out2 = jax.block_until_ready(
        fourier_mlp_forward(cond[:B2], inputs[:B2], params))
    ref2 = ref_forward(cond[:B2], inputs[:B2], params)
    assert out2.shape == (B2, OUT_SHAPE)
    err = float(jnp.max(jnp.abs(out2 - ref2)))
    assert err < 3e-2, f"padded-batch mismatch (B={B2}): max abs err {err}"

    print("KERNEL_OK")
</pallas_src>

<mosaic_0001>
module attributes {stable_mosaic.version = 11 : i64} {
  func.func @kernel(%arg0: i32, %arg1: memref<8x8xf32, #tpu.memory_space<vmem>>, %arg2: memref<2x256xf32, #tpu.memory_space<vmem>>, %arg3: memref<256x128xf32, #tpu.memory_space<vmem>>, %arg4: memref<128x128xf32, #tpu.memory_space<vmem>>, %arg5: memref<8x128xf32, #tpu.memory_space<vmem>>, %arg6: memref<128x128xf32, #tpu.memory_space<vmem>>, %arg7: memref<128x128xf32, #tpu.memory_space<vmem>>, %arg8: memref<128x2xf32, #tpu.memory_space<vmem>>, %arg9: memref<5x128xf32, #tpu.memory_space<vmem>>, %arg10: memref<8x2xf32, #tpu.memory_space<vmem>>) attributes {dimension_semantics = [#tpu.dimension_semantics<parallel>], iteration_bounds = array<i64: 1>, scalar_prefetch = 0 : i64, scratch_operands = 0 : i64, tpu.core_type = #tpu.core_type<tc>, window_params = [{transform_indices = @transform_0, window_bounds = array<i64: 8, 8>}, {pipeline_mode = #tpu.pipeline_mode<synchronous>, transform_indices = @transform_1, window_bounds = array<i64: 2, 256>}, {pipeline_mode = #tpu.pipeline_mode<synchronous>, transform_indices = @transform_2, window_bounds = array<i64: 256, 128>}, {pipeline_mode = #tpu.pipeline_mode<synchronous>, transform_indices = @transform_3, window_bounds = array<i64: 128, 128>}, {pipeline_mode = #tpu.pipeline_mode<synchronous>, transform_indices = @transform_4, window_bounds = array<i64: 8, 128>}, {pipeline_mode = #tpu.pipeline_mode<synchronous>, transform_indices = @transform_5, window_bounds = array<i64: 128, 128>}, {pipeline_mode = #tpu.pipeline_mode<synchronous>, transform_indices = @transform_6, window_bounds = array<i64: 128, 128>}, {pipeline_mode = #tpu.pipeline_mode<synchronous>, transform_indices = @transform_7, window_bounds = array<i64: 128, 2>}, {pipeline_mode = #tpu.pipeline_mode<synchronous>, transform_indices = @transform_8, window_bounds = array<i64: 5, 128>}, {transform_indices = @transform_9, window_bounds = array<i64: 8, 2>}]} {
    %c0 = arith.constant 0 : index
    %c0_0 = arith.constant 0 : index
    %0 = vector.load %arg1[%c0, %c0_0] : memref<8x8xf32, #tpu.memory_space<vmem>>, vector<8x8xf32>
    %1 = vector.extract_strided_slice %0 {offsets = [0, 2], sizes = [8, 1], strides = [1, 1]} : vector<8x8xf32> to vector<8x1xf32>
    %c0_1 = arith.constant 0 : index
    %c0_2 = arith.constant 0 : index
    %2 = vector.load %arg2[%c0_1, %c0_2] : memref<2x256xf32, #tpu.memory_space<vmem>>, vector<1x256xf32>
    %3 = vector.broadcast %2 : vector<1x256xf32> to vector<8x256xf32>
    %4 = vector.broadcast %1 : vector<8x1xf32> to vector<8x256xf32>
    %5 = arith.mulf %3, %4 : vector<8x256xf32>
    %c1 = arith.constant 1 : index
    %c0_3 = arith.constant 0 : index
    %6 = vector.load %arg2[%c1, %c0_3] : memref<2x256xf32, #tpu.memory_space<vmem>>, vector<1x256xf32>
    %7 = vector.broadcast %6 : vector<1x256xf32> to vector<8x256xf32>
    %8 = arith.addf %5, %7 : vector<8x256xf32>
    %9 = math.sin %8 : vector<8x256xf32>
    %c0_4 = arith.constant 0 : index
    %c0_5 = arith.constant 0 : index
    %10 = vector.load %arg9[%c0_4, %c0_5] : memref<5x128xf32, #tpu.memory_space<vmem>>, vector<1x128xf32>
    %c1_6 = arith.constant 1 : index
    %c0_7 = arith.constant 0 : index
    %11 = vector.load %arg9[%c1_6, %c0_7] : memref<5x128xf32, #tpu.memory_space<vmem>>, vector<1x128xf32>
    %c2 = arith.constant 2 : index
    %c0_8 = arith.constant 0 : index
    %12 = vector.load %arg9[%c2, %c0_8] : memref<5x128xf32, #tpu.memory_space<vmem>>, vector<1x128xf32>
    %c3 = arith.constant 3 : index
    %c0_9 = arith.constant 0 : index
    %13 = vector.load %arg9[%c3, %c0_9] : memref<5x128xf32, #tpu.memory_space<vmem>>, vector<1x128xf32>
    %c4 = arith.constant 4 : index
    %c0_10 = arith.constant 0 : index
    %14 = vector.load %arg9[%c4, %c0_10] : memref<5x128xf32, #tpu.memory_space<vmem>>, vector<1x2xf32>
    %c0_11 = arith.constant 0 : index
    %c0_12 = arith.constant 0 : index
    %15 = vector.load %arg3[%c0_11, %c0_12] : memref<256x128xf32, #tpu.memory_space<vmem>>, vector<256x128xf32>
    %cst = arith.constant dense<0.000000e+00> : vector<8x128xf32>
    %16 = tpu.matmul %9, %15, %cst {dimension_numbers = #tpu.dot_dimension_numbers<[1], [0], [0], [1], [0, 0, 1, 1], [], []>} : vector<8x256xf32>, vector<256x128xf32>, vector<8x128xf32> -> vector<8x128xf32>
    %17 = vector.broadcast %10 : vector<1x128xf32> to vector<8x128xf32>
    %18 = arith.addf %16, %17 : vector<8x128xf32>
    %cst_13 = arith.constant 5.000000e-01 : f32
    %19 = vector.broadcast %cst_13 : f32 to vector<8x128xf32>
    %20 = arith.mulf %19, %18 : vector<8x128xf32>
    %cst_14 = arith.constant 0.707106769 : f32
    %21 = vector.broadcast %cst_14 : f32 to vector<8x128xf32>
    %22 = arith.mulf %18, %21 : vector<8x128xf32>
    %23 = math.erf %22 : vector<8x128xf32>
    %cst_15 = arith.constant 1.000000e+00 : f32
    %24 = vector.broadcast %cst_15 : f32 to vector<8x128xf32>
    %25 = arith.addf %24, %23 : vector<8x128xf32>
    %26 = arith.mulf %20, %25 : vector<8x128xf32>
    %c0_16 = arith.constant 0 : index
    %c0_17 = arith.constant 0 : index
    %27 = vector.load %arg4[%c0_16, %c0_17] : memref<128x128xf32, #tpu.memory_space<vmem>>, vector<128x128xf32>
    %cst_18 = arith.constant dense<0.000000e+00> : vector<8x128xf32>
    %28 = tpu.matmul %26, %27, %cst_18 {dimension_numbers = #tpu.dot_dimension_numbers<[1], [0], [0], [1], [0, 0, 1, 1], [], []>} : vector<8x128xf32>, vector<128x128xf32>, vector<8x128xf32> -> vector<8x128xf32>
    %c0_19 = arith.constant 0 : index
    %c0_20 = arith.constant 0 : index
    %29 = vector.load %arg5[%c0_19, %c0_20] : memref<8x128xf32, #tpu.memory_space<vmem>>, vector<8x128xf32>
    %cst_21 = arith.constant dense<0.000000e+00> : vector<8x128xf32>
    %30 = tpu.matmul %0, %29, %cst_21 {dimension_numbers = #tpu.dot_dimension_numbers<[1], [0], [0], [1], [0, 0, 1, 1], [], []>} : vector<8x8xf32>, vector<8x128xf32>, vector<8x128xf32> -> vector<8x128xf32>
    %31 = arith.addf %28, %30 : vector<8x128xf32>
    %32 = vector.broadcast %11 : vector<1x128xf32> to vector<8x128xf32>
    %33 = arith.addf %31, %32 : vector<8x128xf32>
    %cst_22 = arith.constant 5.000000e-01 : f32
    %34 = vector.broadcast %cst_22 : f32 to vector<8x128xf32>
    %35 = arith.mulf %34, %33 : vector<8x128xf32>
    %cst_23 = arith.constant 0.707106769 : f32
    %36 = vector.broadcast %cst_23 : f32 to vector<8x128xf32>
    %37 = arith.mulf %33, %36 : vector<8x128xf32>
    %38 = math.erf %37 : vector<8x128xf32>
    %cst_24 = arith.constant 1.000000e+00 : f32
    %39 = vector.broadcast %cst_24 : f32 to vector<8x128xf32>
    %40 = arith.addf %39, %38 : vector<8x128xf32>
    %41 = arith.mulf %35, %40 : vector<8x128xf32>
    %c0_25 = arith.constant 0 : index
    %c0_26 = arith.constant 0 : index
    %42 = vector.load %arg6[%c0_25, %c0_26] : memref<128x128xf32, #tpu.memory_space<vmem>>, vector<128x128xf32>
    %cst_27 = arith.constant dense<0.000000e+00> : vector<8x128xf32>
    %43 = tpu.matmul %41, %42, %cst_27 {dimension_numbers = #tpu.dot_dimension_numbers<[1], [0], [0], [1], [0, 0, 1, 1], [], []>} : vector<8x128xf32>, vector<128x128xf32>, vector<8x128xf32> -> vector<8x128xf32>
    %44 = vector.broadcast %12 : vector<1x128xf32> to vector<8x128xf32>
    %45 = arith.addf %43, %44 : vector<8x128xf32>
    %cst_28 = arith.constant 5.000000e-01 : f32
    %46 = vector.broadcast %cst_28 : f32 to vector<8x128xf32>
    %47 = arith.mulf %46, %45 : vector<8x128xf32>
    %cst_29 = arith.constant 0.707106769 : f32
    %48 = vector.broadcast %cst_29 : f32 to vector<8x128xf32>
    %49 = arith.mulf %45, %48 : vector<8x128xf32>
    %50 = math.erf %49 : vector<8x128xf32>
    %cst_30 = arith.constant 1.000000e+00 : f32
    %51 = vector.broadcast %cst_30 : f32 to vector<8x128xf32>
    %52 = arith.addf %51, %50 : vector<8x128xf32>
    %53 = arith.mulf %47, %52 : vector<8x128xf32>
    %c0_31 = arith.constant 0 : index
    %c0_32 = arith.constant 0 : index
    %54 = vector.load %arg7[%c0_31, %c0_32] : memref<128x128xf32, #tpu.memory_space<vmem>>, vector<128x128xf32>
    %cst_33 = arith.constant dense<0.000000e+00> : vector<8x128xf32>
    %55 = tpu.matmul %53, %54, %cst_33 {dimension_numbers = #tpu.dot_dimension_numbers<[1], [0], [0], [1], [0, 0, 1, 1], [], []>} : vector<8x128xf32>, vector<128x128xf32>, vector<8x128xf32> -> vector<8x128xf32>
    %56 = vector.broadcast %13 : vector<1x128xf32> to vector<8x128xf32>
    %57 = arith.addf %55, %56 : vector<8x128xf32>
    %cst_34 = arith.constant 5.000000e-01 : f32
    %58 = vector.broadcast %cst_34 : f32 to vector<8x128xf32>
    %59 = arith.mulf %58, %57 : vector<8x128xf32>
    %cst_35 = arith.constant 0.707106769 : f32
    %60 = vector.broadcast %cst_35 : f32 to vector<8x128xf32>
    %61 = arith.mulf %57, %60 : vector<8x128xf32>
    %62 = math.erf %61 : vector<8x128xf32>
    %cst_36 = arith.constant 1.000000e+00 : f32
    %63 = vector.broadcast %cst_36 : f32 to vector<8x128xf32>
    %64 = arith.addf %63, %62 : vector<8x128xf32>
    %65 = arith.mulf %59, %64 : vector<8x128xf32>
    %c0_37 = arith.constant 0 : index
    %c0_38 = arith.constant 0 : index
    %66 = vector.load %arg8[%c0_37, %c0_38] : memref<128x2xf32, #tpu.memory_space<vmem>>, vector<128x2xf32>
    %cst_39 = arith.constant dense<0.000000e+00> : vector<8x2xf32>
    %67 = tpu.matmul %65, %66, %cst_39 {dimension_numbers = #tpu.dot_dimension_numbers<[1], [0], [0], [1], [0, 0, 1, 1], [], []>} : vector<8x128xf32>, vector<128x2xf32>, vector<8x2xf32> -> vector<8x2xf32>
    %68 = vector.broadcast %14 : vector<1x2xf32> to vector<8x2xf32>
    %69 = arith.addf %67, %68 : vector<8x2xf32>
    %c0_40 = arith.constant 0 : index
    %c0_41 = arith.constant 0 : index
    %70 = vector.load %arg10[%c0_40, %c0_41] : memref<8x2xf32, #tpu.memory_space<vmem>>, vector<8x2xf32>
    tpu.vector_store %arg10[%c0_40, %c0_41], %69 {strides = array<i32>} : memref<8x2xf32, #tpu.memory_space<vmem>>, vector<8x2xf32>,
    return
  }
  func.func @transform_0(%arg0: i32) -> (i32, i32) {
    %c0_i32 = arith.constant 0 : i32
    %c0_i32_0 = arith.constant 0 : i32
    return %arg0, %c0_i32 : i32, i32
  }
  func.func @transform_1(%arg0: i32) -> (i32, i32) {
    %c0_i32 = arith.constant 0 : i32
    %c0_i32_0 = arith.constant 0 : i32
    %c0_i32_1 = arith.constant 0 : i32
    return %c0_i32, %c0_i32_0 : i32, i32
  }
  func.func @transform_2(%arg0: i32) -> (i32, i32) {
    %c0_i32 = arith.constant 0 : i32
    %c0_i32_0 = arith.constant 0 : i32
    %c0_i32_1 = arith.constant 0 : i32
    return %c0_i32, %c0_i32_0 : i32, i32
  }
  func.func @transform_3(%arg0: i32) -> (i32, i32) {
    %c0_i32 = arith.constant 0 : i32
    %c0_i32_0 = arith.constant 0 : i32
    %c0_i32_1 = arith.constant 0 : i32
    return %c0_i32, %c0_i32_0 : i32, i32
  }
  func.func @transform_4(%arg0: i32) -> (i32, i32) {
    %c0_i32 = arith.constant 0 : i32
    %c0_i32_0 = arith.constant 0 : i32
    %c0_i32_1 = arith.constant 0 : i32
    return %c0_i32, %c0_i32_0 : i32, i32
  }
  func.func @transform_5(%arg0: i32) -> (i32, i32) {
    %c0_i32 = arith.constant 0 : i32
    %c0_i32_0 = arith.constant 0 : i32
    %c0_i32_1 = arith.constant 0 : i32
    return %c0_i32, %c0_i32_0 : i32, i32
  }
  func.func @transform_6(%arg0: i32) -> (i32, i32) {
    %c0_i32 = arith.constant 0 : i32
    %c0_i32_0 = arith.constant 0 : i32
    %c0_i32_1 = arith.constant 0 : i32
    return %c0_i32, %c0_i32_0 : i32, i32
  }
  func.func @transform_7(%arg0: i32) -> (i32, i32) {
    %c0_i32 = arith.constant 0 : i32
    %c0_i32_0 = arith.constant 0 : i32
    %c0_i32_1 = arith.constant 0 : i32
    return %c0_i32, %c0_i32_0 : i32, i32
  }
  func.func @transform_8(%arg0: i32) -> (i32, i32) {
    %c0_i32 = arith.constant 0 : i32
    %c0_i32_0 = arith.constant 0 : i32
    %c0_i32_1 = arith.constant 0 : i32
    return %c0_i32, %c0_i32_0 : i32, i32
  }
  func.func @transform_9(%arg0: i32) -> (i32, i32) {
    %c0_i32 = arith.constant 0 : i32
    %c0_i32_0 = arith.constant 0 : i32
    return %arg0, %c0_i32 : i32, i32
  }
}

</mosaic_0001>

<bundles_post_ra>
// kernel: tpu_custom_call.1
= control target key start
LH: loop header
LB: loop body
LE: loop exit
PB: predicated region body
PF: predicated region fallthrough
CT: control target
= control target key end

     0   :  { %14 = vsyncpa [#allocation3], 0  ;;  %s1684_s0 = inlined_call_operand.hbm [shape: f32[8,8], index: 0, kind: input, shape index: {}]   ;;  %s1685_s1 = inlined_call_operand.hbm [shape: f32[2,256], index: 1, kind: input, shape index: {}]   ;;  %s1686_s2 = inlined_call_operand.hbm [shape: f32[256,128], index: 2, kind: input, shape index: {}]   ;;  %s1687_s3 = inlined_call_operand.vmem [shape: f32[128,128], index: 3, kind: input, shape index: {}]   ;;  %s1688_s4 = inlined_call_operand.vmem [shape: f32[8,128], index: 4, kind: input, shape index: {}]   ;;  %s1689_s5 = inlined_call_operand.hbm [shape: f32[128,128], index: 5, kind: input, shape index: {}]   ;;  %s1690_s6 = inlined_call_operand.hbm [shape: f32[128,128], index: 6, kind: input, shape index: {}]   ;;  %s1691_s7 = inlined_call_operand.vmem [shape: f32[128,2], index: 7, kind: input, shape index: {}]   ;;  %s1692_s8 = inlined_call_operand.vmem [shape: f32[5,128], index: 8, kind: input, shape index: {}]   ;;  %s1693_s9 = inlined_call_operand.vmem [shape: f32[8,2], index: 9, kind: output, shape index: {}]  }
   0x1   :  { %15 = vsyncpa [#allocation5], 0 }
   0x2   :  { %16 = vsyncpa [#allocation8], 0  ;;  %s1325_s30 = smov [#allocation4]  }
   0x3   :  { %s33_s10 = sshll.u32 %s1325_s30, 4  ;;  %s34_s10 = int_to_ptr.vmem [resolvable:$true] %s33_s10 }
   0x4   :  { %s1227_s11 = scalar_lea.vmem %s34_s10, 64  ;;  %p1232_p1 = scmp.lt.s32.totalorder %s34_s10, %s34_s10 }
   0x5   :  { %p1228_p0 = scmp.ne.s32.totalorder %s34_s10, %s1227_s11  ;;  %p1233_p2 = scmp.lt.s32.totalorder %s1227_s11, %s1227_s11 }
   0x7   :  { %p1234_p3 = por %p1233_p2, %p1232_p1 }
   0x9   :  { %p1235_p4 = pnand %p1234_p3, %p1228_p0 }
   0xb   :  { %1238 = shalt.err (!%p1235_p4)
}
   0xc   :  { %36 = dma.hbm_to_vmem [thread:$0]  %s1685_s1, 64, %s34_s10, [#allocation5]  }
   0xd   :  { %s1326_s14 = smov [#allocation7]   ;;  %s1327_s16 = smov [#allocation2]  }
   0xe   :  { %s58_s15 = sshll.u32 %s1326_s14, 4  ;;  %s23_s17 = sshll.u32 %s1327_s16, 4  ;;  %s59_s15 = int_to_ptr.vmem [resolvable:$true] %s58_s15  ;;  %s24_s17 = int_to_ptr.vmem [resolvable:$true] %s23_s17 }
   0xf   :  { %s1247_s18 = scalar_lea.vmem %s59_s15, 2048  ;;  %p1252_p6 = scmp.lt.s32.totalorder %s59_s15, %s59_s15 }
  0x10   :  { %p1248_p5 = scmp.ne.s32.totalorder %s59_s15, %s1247_s18  ;;  %p1253_p7 = scmp.lt.s32.totalorder %s1247_s18, %s1247_s18 }
  0x12   :  { %p1254_p8 = por %p1253_p7, %p1252_p6 }
  0x14   :  { %p1255_p9 = pnand %p1254_p8, %p1248_p5 }
  0x16   :  { %1258 = shalt.err (!%p1255_p9)
}
  0x17   :  { %s1328_s19 = smov 128   ;;  %s1329_s20 = smov 8  }
  0x18   :  { %64 = dma.hbm_to_vmem [thread:$0]  %s1689_s5, 2048, %s59_s15, [#allocation8], %s1328_s19, %s1328_s19, %s1329_s20  }
  0x19   :  { %s1267_s1 = scalar_lea.vmem %s24_s17, 128  ;;  %p1272_p11 = scmp.lt.s32.totalorder %s24_s17, %s24_s17 }
  0x1a   :  { %p1268_p10 = scmp.ne.s32.totalorder %s24_s17, %s1267_s1  ;;  %p1273_p12 = scmp.lt.s32.totalorder %s1267_s1, %s1267_s1 }
  0x1c   :  { %p1274_p13 = por %p1273_p12, %p1272_p11 }
  0x1e   :  { %p1275_p0 = pnand %p1274_p13, %p1268_p10 }
  0x20   :  { %1278 = shalt.err (!%p1275_p0)
}
  0x21   :  { %26 = dma.hbm_to_vmem [thread:$0]  %s1684_s0, 128, %s24_s17, [#allocation3]  }
  0x22   :  { %s1330_s25 = smov [#allocation6]   ;;  %s1331_s27 = smov [#allocation9]  }
  0x23   :  { %s42_s26 = sshll.u32 %s1330_s25, 4  ;;  %s70_s28 = sshll.u32 %s1331_s27, 4  ;;  %s43_s26 = int_to_ptr.vmem [resolvable:$true] %s42_s26  ;;  %s71_s28 = int_to_ptr.vmem [resolvable:$true] %s70_s28 }
  0x24   :  { %s1287_s29 = scalar_lea.vmem %s43_s26, 4096  ;;  %p1292_p2 = scmp.lt.s32.totalorder %s43_s26, %s43_s26 }
  0x25   :  { %p1288_p1 = scmp.ne.s32.totalorder %s43_s26, %s1287_s29  ;;  %p1293_p3 = scmp.lt.s32.totalorder %s1287_s29, %s1287_s29 }
  0x27   :  { %p1294_p4 = por %p1293_p3, %p1292_p2 }
  0x29   :  { %p1295_p5 = pnand %p1294_p4, %p1288_p1 }
  0x2b   :  { %1298 = shalt.err (!%p1295_p5)
}
  0x2c   :  { %48 = dma.hbm_to_vmem [thread:$0]  %s1686_s2, 4096, %s43_s26, [#allocation5], %s1328_s19, %s1328_s19, %s1329_s20  }
  0x2d   :  { %s1307_s0 = scalar_lea.vmem %s71_s28, 2048  ;;  %p1312_p7 = scmp.lt.s32.totalorder %s71_s28, %s71_s28 }
  0x2e   :  { %p1308_p6 = scmp.ne.s32.totalorder %s71_s28, %s1307_s0  ;;  %p1313_p8 = scmp.lt.s32.totalorder %s1307_s0, %s1307_s0 }
  0x30   :  { %p1314_p9 = por %p1313_p8, %p1312_p7 }
  0x32   :  { %p1315_p10 = pnand %p1314_p9, %p1308_p6 }
  0x34   :  { %1318 = shalt.err (!%p1315_p10)
}
  0x35   :  { %76 = dma.hbm_to_vmem [thread:$0]  %s1690_s6, 2048, %s71_s28, [#allocation8], %s1328_s19, %s1328_s19, %s1329_s20  }
  0x36   :  { %1319 = dma.done.wait [#allocation3], 128  }
  0x37   :  { %1320 = vsyncadd [#allocation3], 4294967168 }
  0x38   :  { %1321 = dma.done.wait [#allocation5], 4160  }
  0x39   :  { %1322 = vsyncadd [#allocation5], 4294963136 }
  0x3a   :  { %1323 = dma.done.wait [#allocation8], 4096  }
  0x3b   :  { %1324 = vsyncadd [#allocation8], 4294963200  ;;  %v1332_v0 = vmov 2   ;;  %v1415_v1 = vld [vmem:[#allocation2] sm:$0xff]  ;;  %v373_v6 = vld [vmem:[#allocation6 + $0xe8] sm:$0xff]  ;;  %vm472_vm0 = vcmask 64512   ;;  %v99_v38 = vlaneseq }
  0x3c   :  { %1202 = vset.pattern.permute.xlu0 %v1332_v0  ;;  %v375_v2 = vld [vmem:[#allocation6 + $0xf8] sm:$0xff]  ;;  %v374_v4 = vld [vmem:[#allocation6 + $0xf0] sm:$0xff]  ;;  %v357_v7 = vld [vmem:[#allocation6 + $0x68] sm:$0xff]  ;;  %v1333_v35 = vmov 0.0   ;;  %vm1334_vm1 = vmmov 0  }
  0x3d   :  { %111 = vperm.xlu0 %1202, %v1415_v1   ;;  %v359_v3 = vld [vmem:[#allocation6 + $0x78] sm:$0xff]  ;;  %928 = vmatprep.subr.mxu0 %v375_v2  ;;  %v358_v5 = vld [vmem:[#allocation6 + $0x70] sm:$0xff]  ;;  %v372_v8 = vld [vmem:[#allocation6 + $0xe0] sm:$0xff]  ;;  %v100_v39 = vshrl.u32 %v99_v38, 7 }
  0x3e   :  { %929 = vmatpush3.msra.mxu0 %v359_v3  ;;  %v356_v9 = vld [vmem:[#allocation6 + $0x60] sm:$0xff]  ;;  %v371_v10 = vld [vmem:[#allocation6 + $0xd8] sm:$0xff]  ;;  %v370_v12 = vld [vmem:[#allocation6 + $0xd0] sm:$0xff]  ;;  %1033 = vmatprep.subr.mxu1 %v1333_v35 }
  0x3f   :  { %930 = vmatprep.subr.mxu0 %v374_v4  ;;  %v355_v11 = vld [vmem:[#allocation6 + $0x58] sm:$0xff]  ;;  %v354_v13 = vld [vmem:[#allocation6 + $0x50] sm:$0xff]  ;;  %v369_v14 = vld [vmem:[#allocation6 + $0xc8] sm:$0xff]  ;;  %1035 = vmatprep.mubr.msk.f32.mxu1 %vm1334_vm1, %v1333_v35  ;;  %v101_v40 = vsub.s32 0, %v100_v39  ;;  %v105_v41 = vsub.s32 1, %v100_v39 }
  0x40   :  { %931 = vmatpush3.msra.mxu0 %v358_v5  ;;  %v353_v15 = vld [vmem:[#allocation6 + $0x48] sm:$0xff]  ;;  %v368_v16 = vld [vmem:[#allocation6 + $0xc0] sm:$0xff]  ;;  %v367_v18 = vld [vmem:[#allocation6 + $0xb8] sm:$0xff] }
  0x41   :  { %932 = vmatprep.subr.mxu0 %v373_v6  ;;  %v352_v17 = vld [vmem:[#allocation6 + $0x40] sm:$0xff]  ;;  %v351_v19 = vld [vmem:[#allocation6 + $0x38] sm:$0xff]  ;;  %v366_v20 = vld [vmem:[#allocation6 + $0xb0] sm:$0xff] }
  0x42   :  { %933 = vmatpush3.msra.mxu0 %v357_v7  ;;  %v350_v21 = vld [vmem:[#allocation6 + $0x30] sm:$0xff]  ;;  %v365_v22 = vld [vmem:[#allocation6 + $0xa8] sm:$0xff]  ;;  %v364_v24 = vld [vmem:[#allocation6 + $0xa0] sm:$0xff] }
  0x43   :  { %934 = vmatprep.subr.mxu0 %v372_v8  ;;  %v349_v23 = vld [vmem:[#allocation6 + $0x28] sm:$0xff]  ;;  %v348_v25 = vld [vmem:[#allocation6 + $0x20] sm:$0xff]  ;;  %v363_v26 = vld [vmem:[#allocation6 + $0x98] sm:$0xff] }
  0x44   :  { %935 = vmatpush3.msra.mxu0 %v356_v9  ;;  %v347_v27 = vld [vmem:[#allocation6 + $0x18] sm:$0xff]  ;;  %v362_v28 = vld [vmem:[#allocation6 + $0x90] sm:$0xff]  ;;  %v361_v30 = vld [vmem:[#allocation6 + $0x88] sm:$0xff] }
  0x45   :  { %936 = vmatprep.subr.mxu0 %v371_v10  ;;  %v346_v29 = vld [vmem:[#allocation6 + $0x10] sm:$0xff]  ;;  %v345_v31 = vld [vmem:[#allocation6 + $0x8] sm:$0xff]  ;;  %v360_v32 = vld [vmem:[#allocation6 + $0x80] sm:$0xff] }
  0x46   :  { %937 = vmatpush3.msra.mxu0 %v355_v11  ;;  %v344_v33 = vld [vmem:[#allocation6] sm:$0xff]  ;;  %v471_v34 = vld [vmem:[%s1688_s4] sm:$0xff]  ;;  %v470_v36 = vld [vmem:[%s1687_s3 + $0x78] sm:$0xff] }
  0x47   :  { %938 = vmatprep.subr.mxu0 %v370_v12  ;;  %1034 = vmatpush3.msra.mxu1 %v471_v34  ;;  %v469_v37 = vld [vmem:[%s1687_s3 + $0x70] sm:$0xff]  ;;  %v97_v42 = vld [vmem:[#allocation4] ss:$2 sm:$0x3]  ;;  %v1335_v12 = vmov 2102212464  }
  0x48   :  { %939 = vmatpush3.msra.mxu0 %v354_v13  ;;  %1036 = vmatmul.mubr.msk.f32.vlgmr.msra.gmra.mxu1 %vm472_vm0, %v1415_v1  ;;  %v117_v43 = vld [vmem:[#allocation4 + $0x1] ss:$2 sm:$0x3]  ;;  %v102_v44 = vrot.slane %v97_v42, %v101_v40  ;;  %v106_v45 = vrot.slane %v97_v42, %v105_v41 }
  0x49   :  { %940 = vmatprep.subr.mxu0 %v369_v14  ;;  %1038 = vmatprep.subr.mxu1 %v1333_v35  ;;  %v122_v46 = vrot.slane %v117_v43, %v101_v40  ;;  %v126_v47 = vrot.slane %v117_v43, %v105_v41  ;;  %v1336_v14 = vmov 920167782  }
  0x4a   :  { %941 = vmatpush3.msra.mxu0 %v353_v15  ;;  %1039 = vmatpush3.msra.mxu1 %v470_v36 }
  0x4b   :  { %942 = vmatprep.subr.mxu0 %v368_v16  ;;  %1070 = vmatprep.mubr.msk.f32.mxu1 %vm1334_vm1, %v1333_v35 }
  0x4c   :  { %943 = vmatpush3.msra.mxu0 %v352_v17  ;;  %1040 = vmatprep.subr.mxu1 %v1333_v35  ;;  %v1337_v17 = vmov 683565275  }
  0x4d   :  { %944 = vmatprep.subr.mxu0 %v367_v18  ;;  %1041 = vmatpush3.msra.mxu1 %v469_v37 }
  0x4e   :  { %945 = vmatpush3.msra.mxu0 %v351_v19  ;;  %1042 = vmatprep.subr.mxu1 %v1333_v35 }
  0x4f   :  { %946 = vmatprep.subr.mxu0 %v366_v20  ;;  %v1338_v20 = vmov 1326507024  }
  0x50   :  { %947 = vmatpush3.msra.mxu0 %v350_v21 }
  0x51   :  { %948 = vmatprep.subr.mxu0 %v365_v22  ;;  %v1339_v22 = vmov 2475754826  }
  0x52   :  { %949 = vmatpush3.msra.mxu0 %v349_v23 }
  0x53   :  { %950 = vmatprep.subr.mxu0 %v364_v24  ;;  %v1340_v24 = vmov 2131351028  }
  0x54   :  { %951 = vmatpush3.msra.mxu0 %v348_v25 }
  0x55   :  { %952 = vmatprep.subr.mxu0 %v363_v26 }
  0x56   :  { %953 = vmatpush3.msra.mxu0 %v347_v27 }
  0x57   :  { %954 = vmatprep.subr.mxu0 %v362_v28 }
  0x58   :  { %955 = vmatpush3.msra.mxu0 %v346_v29 }
  0x59   :  { %956 = vmatprep.subr.mxu0 %v361_v30 }
  0x5a   :  { %957 = vmatpush3.msra.mxu0 %v345_v31 }
  0x5b   :  { %958 = vmatprep.subr.mxu0 %v360_v32 }
  0x5c   :  { %959 = vmatpush3.msra.mxu0 %v344_v33 }
  0x5d   :  { %1073 = vmatprep.subr.mxu0 %v1333_v35 }
  0xb8   :  { %v112_v48 = vpop.permute.xlu0 %111 }
  0xb9   :  { %v114_v49 = vmul.f32 %v112_v48, %v102_v44  ;;  %v115_v50 = vmul.f32 %v112_v48, %v106_v45 }
  0xbb   :  { %v1437_v51 = vadd.f32 %v122_v46, %v114_v49  ;;  %v1439_v52 = vadd.f32 %v126_v47, %v115_v50 }
  0xbd   :  { %v134_v53 = vand.u32 2139095040, %v1437_v51  ;;  %v238_v54 = vand.u32 2139095040, %v1439_v52  ;;  %v235_v55 = vand.u32 2147483647, %v1439_v52  ;;  %v131_v56 = vand.u32 2147483647, %v1437_v51 }
  0xbe   :  { %vm237_vm0 = vcmp.lt.s32.totalorder %v1439_v52, 0 }
  0xbf   :  { %v135_v57 = vshrl.u32 %v134_v53, 23  ;;  %v239_v58 = vshrl.u32 %v238_v54, 23  ;;  %v242_v59 = vand.u32 8388607, %v235_v55  ;;  %v138_v62 = vand.u32 8388607, %v131_v56 }
  0xc1   :  { %v914_v60 = vadd.s32 4294967169, %v135_v57  ;;  %v918_v61 = vadd.s32 4294967169, %v239_v58  ;;  %v243_v1 = vor.u32 8388608, %v242_v59  ;;  %v139_v2 = vor.u32 8388608, %v138_v62 }
  0xc3   :  { %v141_v63 = vadd.s32 1, %v914_v60  ;;  %v245_v0 = vadd.s32 1, %v918_v61  ;;  %v1449_v7 = vshll.u32 %v243_v1, 8  ;;  %v1453_v11 = vshll.u32 %v139_v2, 8 }
  0xc5   :  { %vm142_vm2 = vcmp.gt.s32.totalorder %v141_v63, 0  ;;  %vm246_vm3 = vcmp.gt.s32.totalorder %v245_v0, 0 }
  0xc6   :  { %v143_v3 = vsel %vm142_vm2, %v141_v63, 0  ;;  %v247_v4 = vsel %vm246_vm3, %v245_v0, 0  ;;  %vm236_vm2 = vcmp.le.f32.partialorder %v235_v55, 0.7853982  ;;  %vm133_vm3 = vcmp.lt.s32.totalorder %v1437_v51, 0 }
  0xc7   :  { %v145_v5 = vand.u32 31, %v143_v3  ;;  %v249_v6 = vand.u32 31, %v247_v4  ;;  %v1451_v8 = vshrl.u32 %v143_v3, 5  ;;  %v248_v10 = vshrl.u32 %v247_v4, 5 }
  0xc9   :  { %v146_v9 = vsub.s32 32, %v145_v5  ;;  %v157_v13 = vshll.u32 %v1335_v12, %v145_v5  ;;  %v160_v15 = vshll.u32 %v1336_v14, %v145_v5  ;;  %v250_v16 = vsub.s32 32, %v249_v6 }
  0xca   :  { %v252_v18 = vshll.u32 %v1337_v17, %v249_v6  ;;  %v255_v23 = vshll.u32 %v1339_v22, %v249_v6  ;;  %v258_v25 = vshll.u32 %v1340_v24, %v249_v6  ;;  %v261_v29 = vshll.u32 %v1335_v12, %v249_v6 }
  0xcb   :  { %v158_v19 = vshrl.u32 %v1336_v14, %v146_v9  ;;  %v161_v21 = vshrl.u32 %v1338_v20, %v146_v9  ;;  %v253_v26 = vshrl.u32 %v1339_v22, %v250_v16  ;;  %v256_v27 = vshrl.u32 %v1340_v24, %v250_v16 }
  0xcc   :  { %v259_v28 = vshrl.u32 %v1335_v12, %v250_v16  ;;  %v251_v30 = vshrl.u32 %v1337_v17, %v250_v16  ;;  %v262_v31 = vshrl.u32 %v1336_v14, %v250_v16  ;;  %v264_v32 = vshll.u32 %v1336_v14, %v249_v6 }
  0xcd   :  { %v265_v33 = vshrl.u32 %v1338_v20, %v250_v16  ;;  %v159_v34 = vor.u32 %v158_v19, %v157_v13  ;;  %v254_v36 = vor.u32 %v253_v26, %v252_v18  ;;  %v257_v37 = vor.u32 %v256_v27, %v255_v23 }
  0xce   :  { %v260_v38 = vor.u32 %v259_v28, %v258_v25  ;;  %v162_v39 = vor.u32 %v161_v21, %v160_v15  ;;  %v263_v40 = vor.u32 %v262_v31, %v261_v29  ;;  %vm267_vm4 = vcmp.lt.s32.totalorder %v248_v10, 1 }
  0xcf   :  { %v266_v41 = vor.u32 %v265_v33, %v264_v32  ;;  %vm166_vm5 = vcmp.lt.s32.totalorder %v1451_v8, 4  ;;  %vm269_vm6 = vcmp.lt.s32.totalorder %v248_v10, 3  ;;  %vm270_vm7 = vcmp.lt.s32.totalorder %v248_v10, 4 }
  0xd0   :  { %v271_v42 = vsel %vm267_vm4, %v251_v30, %v254_v36  ;;  %v272_v43 = vsel %vm270_vm7, %v260_v38, 2102212464  ;;  %v275_v44 = vsel %vm267_vm4, %v254_v36, %v257_v37  ;;  %v276_v45 = vsel %vm270_vm7, %v263_v40, 920167782 }
  0xd1   :  { %v279_v46 = vsel %vm267_vm4, %v257_v37, %v260_v38  ;;  %vm268_vm8 = vcmp.lt.s32.totalorder %v248_v10, 2  ;;  %v273_v47 = vsel %vm269_vm6, %v257_v37, %v272_v43  ;;  %v277_v48 = vsel %vm269_vm6, %v260_v38, %v276_v45 }
  0xd2   :  { %v280_v49 = vsel %vm270_vm7, %v266_v41, 1326507024  ;;  %v172_v50 = vsel %vm166_vm5, %v159_v34, 920167782  ;;  %v176_v53 = vsel %vm166_vm5, %v162_v39, 1326507024  ;;  %v278_v54 = vsel %vm268_vm8, %v275_v44, %v277_v48 }
  0xd3   :  { %v281_v57 = vsel %vm269_vm6, %v263_v40, %v280_v49  ;;  %v274_v58 = vsel %vm268_vm8, %v271_v42, %v273_v47  ;;  %v1461_v60 = vmul.u32.u64.low %v1449_v7, %v278_v54  ;;  %v1462_v61 = vmul.u32.u64.high %v1449_v7, %v278_v54, %v1461_v60 }
  0xd4   :  { %v282_v59 = vsel %vm268_vm8, %v279_v46, %v281_v57  ;;  %v148_v0 = vshll.u32 %v1337_v17, %v145_v5  ;;  %v149_v1 = vshrl.u32 %v1339_v22, %v146_v9  ;;  %v151_v2 = vshll.u32 %v1339_v22, %v145_v5 }
  0xd5   :  { %v1465_v62 = vmul.u32.u64.low %v1449_v7, %v282_v59  ;;  %v1466_v63 = vmul.u32.u64.high %v1449_v7, %v282_v59, %v1465_v62  ;;  %v152_v3 = vshrl.u32 %v1340_v24, %v146_v9  ;;  %v154_v4 = vshll.u32 %v1340_v24, %v145_v5 }
  0xd6   :  { %v155_v6 = vshrl.u32 %v1335_v12, %v146_v9  ;;  %v290_v10 = vmul.u32 %v1449_v7, %v274_v58  ;;  %v147_v13 = vshrl.u32 %v1337_v17, %v146_v9  ;;  %v150_v14 = vor.u32 %v149_v1, %v148_v0 }
  0xd7   :  { %vm163_vm9 = vcmp.lt.s32.totalorder %v1451_v8, 1  ;;  %v293_v15 = vadd.s32 1, %v1462_v61  ;;  %v153_v16 = vor.u32 %v152_v3, %v151_v2  ;;  %vm165_vm10 = vcmp.lt.s32.totalorder %v1451_v8, 3 }
  0xd8   :  { %v156_v18 = vor.u32 %v155_v6, %v154_v4  ;;  %vm292_vm11 = vc.u32 %v1466_v63, %v1461_v60  ;;  %vm164_vm12 = vcmp.lt.s32.totalorder %v1451_v8, 2  ;;  %v167_v5 = vsel %vm163_vm9, %v147_v13, %v150_v14 }
  0xd9   :  { %v177_v12 = vsel %vm165_vm10, %v159_v34, %v176_v53  ;;  %v294_v7 = vsel %vm292_vm11, %v293_v15, %v1462_v61  ;;  %v171_v17 = vsel %vm163_vm9, %v150_v14, %v153_v16  ;;  %v291_v48 = vadd.s32 %v1461_v60, %v1466_v63 }
  0xda   :  { %v168_v9 = vsel %vm166_vm5, %v156_v18, 2102212464  ;;  %v173_v19 = vsel %vm165_vm10, %v156_v18, %v172_v50  ;;  %v295_v20 = vadd.s32 %v294_v7, %v290_v10  ;;  %v175_v23 = vsel %vm163_vm9, %v153_v16, %v156_v18 }
  0xdb   :  { %v169_v21 = vsel %vm165_vm10, %v153_v16, %v168_v9  ;;  %v174_v22 = vsel %vm164_vm12, %v171_v17, %v173_v19  ;;  %v178_v24 = vsel %vm164_vm12, %v175_v23, %v177_v12  ;;  %vm132_vm4 = vcmp.le.f32.partialorder %v131_v56, 0.7853982 }
  0xdc   :  { %v1484_v25 = vmul.u32.u64.low %v1453_v11, %v174_v22  ;;  %v1485_v26 = vmul.u32.u64.high %v1453_v11, %v174_v22, %v1484_v25  ;;  %v296_v27 = vadd.s32 536870912, %v295_v20  ;;  %v170_v30 = vsel %vm164_vm12, %v167_v5, %v169_v21 }
  0xdd   :  { %v1488_v28 = vmul.u32.u64.low %v1453_v11, %v178_v24  ;;  %v1489_v29 = vmul.u32.u64.high %v1453_v11, %v178_v24, %v1488_v28  ;;  %v186_v34 = vmul.u32 %v1453_v11, %v170_v30  ;;  %vm327_vm8 = vweird.f32 %v1439_v52 }
  0xde   :  { %v297_v31 = vshrl.u32 %v296_v27, 30  ;;  %v189_v32 = vadd.s32 1, %v1485_v26  ;;  %vm223_vm12 = vweird.f32 %v1437_v51 }
  0xdf   :  { %vm188_vm13 = vc.u32 %v1489_v29, %v1484_v25  ;;  %v187_v4 = vadd.s32 %v1484_v25, %v1489_v29 }
  0xe0   :  { %v298_v33 = vshll.u32 %v297_v31, 30  ;;  %v190_v8 = vsel %vm188_vm13, %v189_v32, %v1485_v26  ;;  %v321_v16 = vsub.s32 4, %v297_v31 }
  0xe1   :  { %v191_v37 = vadd.s32 %v190_v8, %v186_v34 }
  0xe2   :  { %v299_v36 = vsub.s32 %v295_v20, %v298_v33  ;;  %v322_v17 = vsel %vm237_vm0, %v321_v16, %v297_v31 }
  0xe3   :  { %v192_v39 = vadd.s32 536870912, %v191_v37  ;;  %v324_v22 = vsel %vm236_vm2, 0, %v322_v17  ;;  %v634_v17 = vld [vmem:[#allocation7 + $0x48] sm:$0xff] }
  0xe4   :  { %v301_v38 = vsub.s32 0, %v299_v36  ;;  %v328_v25 = vadd.s32 3, %v324_v22  ;;  %v630_v22 = vld [vmem:[#allocation7 + $0x28] sm:$0xff] }
  0xe5   :  { %v193_v41 = vshrl.u32 %v192_v39, 30 }
  0xe6   :  { %v919_v40 = vmin.u32 %v301_v38, %v299_v36  ;;  %v329_v28 = vand.u32 3, %v328_v25  ;;  %v627_v25 = vld [vmem:[#allocation7 + $0x10] sm:$0xff] }
  0xe7   :  { %v194_v43 = vshll.u32 %v193_v41, 30  ;;  %v217_v24 = vsub.s32 4, %v193_v41 }
  0xe8   :  { %v303_v42 = vclz %v919_v40  ;;  %vm334_vm5 = vcmp.eq.s32.totalorder %v329_v28, 2  ;;  %vm331_vm6 = vcmp.eq.s32.totalorder %v329_v28, 0  ;;  %vm330_vm7 = vcmp.lt.s32.totalorder %v329_v28, 2  ;;  %v734_v28 = vld [vmem:[#allocation9 + $0x70] sm:$0xff] }
  0xe9   :  { %v195_v45 = vsub.s32 %v191_v37, %v194_v43  ;;  %v218_v27 = vsel %vm133_vm3, %v217_v24, %v193_v41  ;;  %v628_v24 = vld [vmem:[#allocation7 + $0x18] sm:$0xff] }
  0xea   :  { %v920_v44 = vadd.s32 4294967294, %v303_v42  ;;  %v220_v30 = vsel %vm132_vm4, 0, %v218_v27  ;;  %v735_v27 = vld [vmem:[#allocation9 + $0x78] sm:$0xff] }
  0xeb   :  { %v197_v47 = vsub.s32 0, %v195_v45  ;;  %v224_v8 = vadd.s32 3, %v220_v30  ;;  %v732_v30 = vld [vmem:[#allocation9 + $0x60] sm:$0xff] }
  0xec   :  { %vm921_vm14 = vcmp.lt.s32.totalorder %v920_v44, 0 }
  0xed   :  { %v306_v46 = vsel %vm921_vm14, 0, %v920_v44  ;;  %v915_v50 = vmin.u32 %v197_v47, %v195_v45  ;;  %v225_v38 = vand.u32 3, %v224_v8  ;;  %v467_v47 = vld [vmem:[%s1687_s3 + $0x60] sm:$0xff] }
  0xee   :  { %v307_v11 = vsub.s32 32, %v306_v46  ;;  %v311_v49 = vsub.s32 4294967266, %v306_v46  ;;  %v308_v53 = vshll.u32 %v299_v36, %v306_v46 }
  0xef   :  { %v199_v58 = vclz %v915_v50  ;;  %vm230_vm9 = vcmp.eq.s32.totalorder %v225_v38, 2  ;;  %vm227_vm10 = vcmp.eq.s32.totalorder %v225_v38, 0  ;;  %vm226_vm11 = vcmp.lt.s32.totalorder %v225_v38, 2  ;;  %v462_v50 = vld [vmem:[%s1687_s3 + $0x38] sm:$0xff] }
  0xf0   :  { %v309_v54 = vshrl.u32 %v291_v48, %v307_v11  ;;  %v312_v57 = vadd.s32 127, %v311_v49  ;;  %v465_v48 = vld [vmem:[%s1687_s3 + $0x50] sm:$0xff]  ;;  %v464_v11 = vld [vmem:[%s1687_s3 + $0x48] sm:$0xff]  ;;  %v463_v49 = vld [vmem:[%s1687_s3 + $0x40] sm:$0xff] }
  0xf1   :  { %v916_v62 = vadd.s32 4294967294, %v199_v58  ;;  %v458_v58 = vld [vmem:[%s1687_s3 + $0x18] sm:$0xff] }
  0xf2   :  { %v310_v59 = vor.u32 %v309_v54, %v308_v53  ;;  %v313_v61 = vshll.u32 %v312_v57, 23  ;;  %v461_v53 = vld [vmem:[%s1687_s3 + $0x30] sm:$0xff]  ;;  %v460_v54 = vld [vmem:[%s1687_s3 + $0x28] sm:$0xff]  ;;  %v459_v57 = vld [vmem:[%s1687_s3 + $0x20] sm:$0xff] }
  0xf3   :  { %vm917_vm15 = vcmp.lt.s32.totalorder %v916_v62, 0 }
  0xf4   :  { %v314_v0 = vor.u32 4788187, %v313_v61  ;;  %v317_v2 = vcvt.s32.f32 %v310_v59  ;;  %v202_v3 = vsel %vm917_vm15, 0, %v916_v62  ;;  %v457_v59 = vld [vmem:[%s1687_s3 + $0x10] sm:$0xff]  ;;  %v456_v61 = vld [vmem:[%s1687_s3 + $0x8] sm:$0xff]  ;;  %v455_v62 = vld [vmem:[%s1687_s3] sm:$0xff] }
  0xf5   :  { %v203_v6 = vsub.s32 32, %v202_v3  ;;  %v207_v10 = vsub.s32 4294967266, %v202_v3  ;;  %v204_v63 = vshll.u32 %v195_v45, %v202_v3 }
  0xf6   :  { %v315_v1 = vand.u32 2147483647, %v314_v0 }
  0xf7   :  { %v205_v13 = vshrl.u32 %v187_v4, %v203_v6  ;;  %v208_v14 = vadd.s32 127, %v207_v10  ;;  %v638_v4 = vld [vmem:[#allocation7 + $0x68] sm:$0xff]  ;;  %v922_v10 = vld [vmem:[%s1692_s8] ss:$0 sm:$0xff] }
  0xf8   :  { %v318_v60 = vmul.f32 %v317_v2, %v315_v1  ;;  %v640_v1 = vld [vmem:[#allocation7 + $0x78] sm:$0xff]  ;;  %v639_v2 = vld [vmem:[#allocation7 + $0x70] sm:$0xff] }
  0xf9   :  { %v206_v18 = vor.u32 %v205_v13, %v204_v63  ;;  %v209_v5 = vshll.u32 %v208_v14, 23 }
  0xfa   :  { %v319_v15 = vxor.u32 2147483648, %v318_v60 }
  0xfb   :  { %v210_v9 = vor.u32 4788187, %v209_v5  ;;  %v213_v20 = vcvt.s32.f32 %v206_v18 }
  0xfc   :  { %v320_v12 = vsel %vm237_vm0, %v319_v15, %v318_v60 }
  0xfd   :  { %v323_v7 = vsel %vm236_vm2, %v1439_v52, %v320_v12  ;;  %v211_v19 = vand.u32 2147483647, %v210_v9  ;;  %v468_v52 = vld [vmem:[%s1687_s3 + $0x68] sm:$0xff]  ;;  %v635_v9 = vld [vmem:[#allocation7 + $0x50] sm:$0xff] }
  0xfe   :  { %1203 = vcosq.f32 %v323_v7  ;;  %1043 = vmatpush3.msra.mxu1 %v468_v52  ;;  %v637_v12 = vld [vmem:[#allocation7 + $0x60] sm:$0xff] }
  0xff   :  { %1205 = vsinq.f32 %v323_v7  ;;  %v214_v21 = vmul.f32 %v213_v20, %v211_v19  ;;  %1044 = vmatprep.subr.mxu1 %v1333_v35  ;;  %v636_v7 = vld [vmem:[#allocation7 + $0x58] sm:$0xff]  ;;  %v633_v19 = vld [vmem:[#allocation7 + $0x40] sm:$0xff] }
 0x100   :  { %1045 = vmatpush3.msra.mxu1 %v467_v47  ;;  %v632_v20 = vld [vmem:[#allocation7 + $0x38] sm:$0xff]  ;;  %v724_v52 = vld [vmem:[#allocation9 + $0x20] sm:$0xff] }
 0x101   :  { %v215_v23 = vxor.u32 2147483648, %v214_v21  ;;  %1046 = vmatprep.subr.mxu1 %v1333_v35  ;;  %v723_v47 = vld [vmem:[#allocation9 + $0x18] sm:$0xff] }
 0x103   :  { %v216_v55 = vsel %vm133_vm3, %v215_v23, %v214_v21  ;;  %v631_v21 = vld [vmem:[#allocation7 + $0x30] sm:$0xff]  ;;  %v629_v23 = vld [vmem:[#allocation7 + $0x20] sm:$0xff] }
 0x104   :  { %v219_v26 = vsel %vm132_vm4, %v1437_v51, %v216_v55  ;;  %v466_v51 = vld [vmem:[%s1687_s3 + $0x58] sm:$0xff] }
 0x105   :  { %1207 = vcosq.f32 %v219_v26  ;;  %1047 = vmatpush3.msra.mxu1 %v466_v51  ;;  %v626_v55 = vld [vmem:[#allocation7 + $0x8] sm:$0xff]  ;;  %v722_v51 = vld [vmem:[#allocation9 + $0x10] sm:$0xff] }
 0x106   :  { %1209 = vsinq.f32 %v219_v26  ;;  %1048 = vmatprep.subr.mxu1 %v1333_v35  ;;  %v625_v26 = vld [vmem:[#allocation7] sm:$0xff] }
 0x107   :  { %1049 = vmatpush3.msra.mxu1 %v465_v48  ;;  %v721_v48 = vld [vmem:[#allocation9 + $0x8] sm:$0xff] }
 0x108   :  { %1050 = vmatprep.subr.mxu1 %v1333_v35  ;;  %v1563_v0 = vpop.f32.mrf.mxu1 }
 0x109   :  { %1051 = vmatpush3.msra.mxu1 %v464_v11  ;;  %v720_v11 = vld [vmem:[#allocation9] sm:$0xff] }
 0x10a   :  { %1052 = vmatprep.subr.mxu1 %v1333_v35  ;;  %v1037_v3 = vpop.f32.mrf.mxu1 }
 0x10b   :  { %v1204_v29 = vpop.eup %1203  ;;  %1053 = vmatpush3.msra.mxu1 %v463_v49  ;;  %v830_v49 = vld [vmem:[%s1691_s7 + $0x78] sm:$0xff] }
 0x10c   :  { %v1206_v31 = vpop.eup %1205  ;;  %v335_v32 = vxor.u32 2147483648, %v1204_v29  ;;  %1054 = vmatprep.subr.mxu1 %v1333_v35 }
 0x10d   :  { %v332_v33 = vxor.u32 2147483648, %v1206_v31  ;;  %1055 = vmatpush3.msra.mxu1 %v462_v50  ;;  %v829_v50 = vld [vmem:[%s1691_s7 + $0x70] sm:$0xff] }
 0x10e   :  { %v336_v34 = vsel %vm334_vm5, %v335_v32, %v1206_v31  ;;  %1056 = vmatprep.subr.mxu1 %v1333_v35  ;;  %v924_v31 = vld [vmem:[%s1692_s8 + $0x1] ss:$0 sm:$0xff] }
 0x10f   :  { %v333_v36 = vsel %vm331_vm6, %v1204_v29, %v332_v33  ;;  %1057 = vmatpush3.msra.mxu1 %v461_v53  ;;  %v733_v29 = vld [vmem:[#allocation9 + $0x68] sm:$0xff]  ;;  %v828_v53 = vld [vmem:[%s1691_s7 + $0x68] sm:$0xff] }
 0x110   :  { %v337_v56 = vsel %vm330_vm7, %v333_v36, %v336_v34  ;;  %1058 = vmatprep.subr.mxu1 %v1333_v35 }
 0x111   :  { %v338_v37 = vsel %vm327_vm8, nan, %v337_v56  ;;  %1059 = vmatpush3.msra.mxu1 %v460_v54  ;;  %v827_v54 = vld [vmem:[%s1691_s7 + $0x60] sm:$0xff] }
 0x112   :  { %444 = vmatprep.mubr.f32.mxu0 %v338_v37  ;;  %v1208_v39 = vpop.eup %1207  ;;  %1060 = vmatprep.subr.mxu1 %v1333_v35 }
 0x113   :  { %v1210_v40 = vpop.eup %1209  ;;  %v231_v41 = vxor.u32 2147483648, %v1208_v39  ;;  %1061 = vmatpush3.msra.mxu1 %v459_v57  ;;  %v925_v57 = vld [vmem:[%s1692_s8 + $0x2] ss:$0 sm:$0xff] }
 0x114   :  { %v228_v42 = vxor.u32 2147483648, %v1210_v40  ;;  %1062 = vmatprep.subr.mxu1 %v1333_v35 }
 0x115   :  { %v232_v43 = vsel %vm230_vm9, %v231_v41, %v1210_v40  ;;  %1063 = vmatpush3.msra.mxu1 %v458_v58  ;;  %v731_v40 = vld [vmem:[#allocation9 + $0x58] sm:$0xff]  ;;  %v730_v41 = vld [vmem:[#allocation9 + $0x50] sm:$0xff] }
 0x116   :  { %v229_v44 = vsel %vm227_vm10, %v1208_v39, %v228_v42  ;;  %1064 = vmatprep.subr.mxu1 %v1333_v35  ;;  %v729_v42 = vld [vmem:[#allocation9 + $0x48] sm:$0xff] }
 0x117   :  { %v233_v45 = vsel %vm226_vm11, %v229_v44, %v232_v43  ;;  %1065 = vmatpush3.msra.mxu1 %v457_v59  ;;  %v728_v43 = vld [vmem:[#allocation9 + $0x40] sm:$0xff]  ;;  %v727_v44 = vld [vmem:[#allocation9 + $0x38] sm:$0xff] }
 0x118   :  { %v234_v46 = vsel %vm223_vm12, nan, %v233_v45  ;;  %1066 = vmatprep.subr.mxu1 %v1333_v35  ;;  %v726_v45 = vld [vmem:[#allocation9 + $0x30] sm:$0xff] }
 0x119   :  { %445 = vmatmul.mubr.f32.vlgmr.msra.gmra.mxu0 %v234_v46  ;;  %1067 = vmatpush3.msra.mxu1 %v456_v61  ;;  %v725_v46 = vld [vmem:[#allocation9 + $0x28] sm:$0xff] }
 0x11a   :  { %1105 = vmatprep.mubr.msk.f32.mxu0 %vm1334_vm1, %v1333_v35  ;;  %1068 = vmatprep.subr.mxu1 %v1333_v35 }
 0x11b   :  { %1074 = vmatpush3.msra.mxu0 %v640_v1  ;;  %1069 = vmatpush3.msra.mxu1 %v455_v62 }
 0x11c   :  { %1075 = vmatprep.subr.mxu0 %v1333_v35  ;;  %1108 = vmatprep.subr.mxu1 %v1333_v35 }
 0x11d   :  { %1076 = vmatpush3.msra.mxu0 %v639_v2 }
 0x11e   :  { %1077 = vmatprep.subr.mxu0 %v1333_v35 }
 0x11f   :  { %1078 = vmatpush3.msra.mxu0 %v638_v4  ;;  %v826_v4 = vld [vmem:[%s1691_s7 + $0x58] sm:$0xff] }
 0x120   :  { %1079 = vmatprep.subr.mxu0 %v1333_v35 }
 0x121   :  { %1080 = vmatpush3.msra.mxu0 %v637_v12  ;;  %v815_v12 = vld [vmem:[%s1691_s7] sm:$0xff] }
 0x122   :  { %1081 = vmatprep.subr.mxu0 %v1333_v35 }
 0x123   :  { %1082 = vmatpush3.msra.mxu0 %v636_v7  ;;  %v926_v7 = vld [vmem:[%s1692_s8 + $0x3] ss:$0 sm:$0xff] }
 0x124   :  { %1083 = vmatprep.subr.mxu0 %v1333_v35 }
 0x125   :  { %1084 = vmatpush3.msra.mxu0 %v635_v9 }
 0x126   :  { %1085 = vmatprep.subr.mxu0 %v1333_v35 }
 0x127   :  { %1086 = vmatpush3.msra.mxu0 %v634_v17 }
 0x128   :  { %1087 = vmatprep.subr.mxu0 %v1333_v35 }
 0x129   :  { %1088 = vmatpush3.msra.mxu0 %v633_v19 }
 0x12a   :  { %1089 = vmatprep.subr.mxu0 %v1333_v35 }
 0x12b   :  { %1090 = vmatpush3.msra.mxu0 %v632_v20 }
 0x12c   :  { %1091 = vmatprep.subr.mxu0 %v1333_v35 }
 0x12d   :  { %1092 = vmatpush3.msra.mxu0 %v631_v21 }
 0x12e   :  { %1093 = vmatprep.subr.mxu0 %v1333_v35 }
 0x12f   :  { %1094 = vmatpush3.msra.mxu0 %v630_v22 }
 0x130   :  { %1095 = vmatprep.subr.mxu0 %v1333_v35 }
 0x131   :  { %1096 = vmatpush3.msra.mxu0 %v629_v23 }
 0x132   :  { %1097 = vmatprep.subr.mxu0 %v1333_v35 }
 0x133   :  { %1098 = vmatpush3.msra.mxu0 %v628_v24 }
 0x134   :  { %1099 = vmatprep.subr.mxu0 %v1333_v35 }
 0x135   :  { %1100 = vmatpush3.msra.mxu0 %v627_v25  ;;  %v927_v25 = vld [vmem:[%s1692_s8 + $0x4] ss:$0 sm:$0xff] }
 0x136   :  { %1101 = vmatprep.subr.mxu0 %v1333_v35 }
 0x137   :  { %1102 = vmatpush3.msra.mxu0 %v626_v55 }
 0x138   :  { %1103 = vmatprep.subr.mxu0 %v1333_v35 }
 0x139   :  { %1104 = vmatpush3.msra.mxu0 %v625_v26 }
 0x13a   :  { %1143 = vmatprep.subr.mxu0 %v1333_v35 }
 0x1d9   :  { %v960_v6 = vpop.f32.mrf.mxu0 }
 0x1db   :  { %v961_v60 = vpop.f32.mrf.mxu0 }
 0x1dc   :  { %v962_v63 = vadd.f32 %v961_v60, %v960_v6  ;;  %v825_v6 = vld [vmem:[%s1691_s7 + $0x50] sm:$0xff]  ;;  %v823_v60 = vld [vmem:[%s1691_s7 + $0x40] sm:$0xff] }
 0x1de   :  { %v447_v13 = vadd.f32 %v962_v63, %v922_v10  ;;  %v824_v10 = vld [vmem:[%s1691_s7 + $0x48] sm:$0xff]  ;;  %v822_v63 = vld [vmem:[%s1691_s7 + $0x38] sm:$0xff] }
 0x1e0   :  { %v451_v14 = vmul.f32 0.70710677, %v447_v13  ;;  %v450_v16 = vmul.f32 0.5, %v447_v13  ;;  %v821_v13 = vld [vmem:[%s1691_s7 + $0x30] sm:$0xff] }
 0x1e2   :  { %1211 = verf.f32 %v451_v14  ;;  %v820_v14 = vld [vmem:[%s1691_s7 + $0x28] sm:$0xff] }
 0x1ef   :  { %v1212_v15 = vpop.eup %1211 }
 0x1f0   :  { %v453_v18 = vadd.f32 1.0, %v1212_v15  ;;  %v819_v15 = vld [vmem:[%s1691_s7 + $0x20] sm:$0xff] }
 0x1f2   :  { %v454_v5 = vmul.f32 %v453_v18, %v450_v16  ;;  %v818_v16 = vld [vmem:[%s1691_s7 + $0x18] sm:$0xff]  ;;  %v817_v18 = vld [vmem:[%s1691_s7 + $0x10] sm:$0xff] }
 0x1f4   :  { %1071 = vmatmul.mubr.f32.vlgmr.msra.gmra.mxu1 %v454_v5  ;;  %v816_v5 = vld [vmem:[%s1691_s7 + $0x8] sm:$0xff] }
 0x1f5   :  { %1140 = vmatprep.mubr.msk.f32.mxu1 %vm1334_vm1, %v1333_v35  ;;  %1109 = vmatpush3.msra.mxu1 %v735_v27 }
 0x1f6   :  { %1110 = vmatprep.subr.mxu1 %v1333_v35 }
 0x1f7   :  { %1111 = vmatpush3.msra.mxu1 %v734_v28 }
 0x1f8   :  { %1112 = vmatprep.subr.mxu1 %v1333_v35 }
 0x1f9   :  { %1113 = vmatpush3.msra.mxu1 %v733_v29 }
 0x1fa   :  { %1114 = vmatprep.subr.mxu1 %v1333_v35 }
 0x1fb   :  { %1115 = vmatpush3.msra.mxu1 %v732_v30 }
 0x1fc   :  { %1116 = vmatprep.subr.mxu1 %v1333_v35 }
 0x1fd   :  { %1117 = vmatpush3.msra.mxu1 %v731_v40 }
 0x1fe   :  { %1118 = vmatprep.subr.mxu1 %v1333_v35 }
 0x1ff   :  { %1119 = vmatpush3.msra.mxu1 %v730_v41 }
 0x200   :  { %1120 = vmatprep.subr.mxu1 %v1333_v35 }
 0x201   :  { %1121 = vmatpush3.msra.mxu1 %v729_v42 }
 0x202   :  { %1122 = vmatprep.subr.mxu1 %v1333_v35 }
 0x203   :  { %1123 = vmatpush3.msra.mxu1 %v728_v43 }
 0x204   :  { %1124 = vmatprep.subr.mxu1 %v1333_v35 }
 0x205   :  { %1125 = vmatpush3.msra.mxu1 %v727_v44 }
 0x206   :  { %1126 = vmatprep.subr.mxu1 %v1333_v35 }
 0x207   :  { %1127 = vmatpush3.msra.mxu1 %v726_v45 }
 0x208   :  { %1128 = vmatprep.subr.mxu1 %v1333_v35 }
 0x209   :  { %1129 = vmatpush3.msra.mxu1 %v725_v46 }
 0x20a   :  { %1130 = vmatprep.subr.mxu1 %v1333_v35 }
 0x20b   :  { %1131 = vmatpush3.msra.mxu1 %v724_v52 }
 0x20c   :  { %1132 = vmatprep.subr.mxu1 %v1333_v35 }
 0x20d   :  { %1133 = vmatpush3.msra.mxu1 %v723_v47 }
 0x20e   :  { %1134 = vmatprep.subr.mxu1 %v1333_v35 }
 0x20f   :  { %1135 = vmatpush3.msra.mxu1 %v722_v51 }
 0x210   :  { %1136 = vmatprep.subr.mxu1 %v1333_v35 }
 0x211   :  { %1137 = vmatpush3.msra.mxu1 %v721_v48 }
 0x212   :  { %1138 = vmatprep.subr.mxu1 %v1333_v35 }
 0x213   :  { %1139 = vmatpush3.msra.mxu1 %v720_v11 }
 0x2b4   :  { %v611_v32 = vpop.f32.mrf.mxu1 }
 0x2b5   :  { %v612_v33 = vadd.f32 %v611_v32, %v1563_v0 }
 0x2b6   :  { %v1072_v34 = vpop.f32.mrf.mxu1 }
 0x2b7   :  { %v619_v8 = vadd.f32 %v924_v31, %v612_v33 }
 0x2b9   :  { %v621_v36 = vmul.f32 0.70710677, %v619_v8  ;;  %v620_v37 = vmul.f32 0.5, %v619_v8 }
 0x2bb   :  { %1213 = verf.f32 %v621_v36 }
 0x2c8   :  { %v1214_v56 = vpop.eup %1213 }
 0x2c9   :  { %v623_v38 = vadd.f32 1.0, %v1214_v56 }
 0x2cb   :  { %v624_v39 = vmul.f32 %v623_v38, %v620_v37 }
 0x2cd   :  { %1106 = vmatmul.mubr.f32.vlgmr.msra.gmra.mxu0 %v624_v39 }
 0x2ce   :  { %1175 = vmatprep.mubr.msk.f32.mxu0 %vm1334_vm1, %v1333_v35  ;;  %1144 = vmatpush3.msra.mxu0 %v830_v49  ;;  %vm905_vm1 = vcmask 15360  }
 0x2cf   :  { %1145 = vmatprep.subr.mxu0 %v1333_v35 }
 0x2d0   :  { %1146 = vmatpush3.msra.mxu0 %v829_v50 }
 0x2d1   :  { %1147 = vmatprep.subr.mxu0 %v1333_v35 }
 0x2d2   :  { %1148 = vmatpush3.msra.mxu0 %v828_v53 }
 0x2d3   :  { %1149 = vmatprep.subr.mxu0 %v1333_v35 }
 0x2d4   :  { %1150 = vmatpush3.msra.mxu0 %v827_v54 }
 0x2d5   :  { %1151 = vmatprep.subr.mxu0 %v1333_v35 }
 0x2d6   :  { %1152 = vmatpush3.msra.mxu0 %v826_v4 }
 0x2d7   :  { %1153 = vmatprep.subr.mxu0 %v1333_v35 }
 0x2d8   :  { %1154 = vmatpush3.msra.mxu0 %v825_v6 }
 0x2d9   :  { %1155 = vmatprep.subr.mxu0 %v1333_v35 }
 0x2da   :  { %1156 = vmatpush3.msra.mxu0 %v824_v10 }
 0x2db   :  { %1157 = vmatprep.subr.mxu0 %v1333_v35 }
 0x2dc   :  { %1158 = vmatpush3.msra.mxu0 %v823_v60 }
 0x2dd   :  { %1159 = vmatprep.subr.mxu0 %v1333_v35 }
 0x2de   :  { %1160 = vmatpush3.msra.mxu0 %v822_v63 }
 0x2df   :  { %1161 = vmatprep.subr.mxu0 %v1333_v35 }
 0x2e0   :  { %1162 = vmatpush3.msra.mxu0 %v821_v13 }
 0x2e1   :  { %1163 = vmatprep.subr.mxu0 %v1333_v35 }
 0x2e2   :  { %1164 = vmatpush3.msra.mxu0 %v820_v14 }
 0x2e3   :  { %1165 = vmatprep.subr.mxu0 %v1333_v35 }
 0x2e4   :  { %1166 = vmatpush3.msra.mxu0 %v819_v15 }
 0x2e5   :  { %1167 = vmatprep.subr.mxu0 %v1333_v35 }
 0x2e6   :  { %1168 = vmatpush3.msra.mxu0 %v818_v16 }
 0x2e7   :  { %1169 = vmatprep.subr.mxu0 %v1333_v35 }
 0x2e8   :  { %1170 = vmatpush3.msra.mxu0 %v817_v18 }
 0x2e9   :  { %1171 = vmatprep.subr.mxu0 %v1333_v35 }
 0x2ea   :  { %1172 = vmatpush3.msra.mxu0 %v816_v5 }
 0x2eb   :  { %1173 = vmatprep.subr.mxu0 %v1333_v35 }
 0x2ec   :  { %1174 = vmatpush3.msra.mxu0 %v815_v12 }
 0x38d   :  { %v711_v58 = vpop.f32.mrf.mxu0 }
 0x38e   :  { %v712_v59 = vadd.f32 %v925_v57, %v711_v58 }
 0x38f   :  { %v1107_v61 = vpop.f32.mrf.mxu0 }
 0x390   :  { %v716_v62 = vmul.f32 0.70710677, %v712_v59  ;;  %v715_v1 = vmul.f32 0.5, %v712_v59 }
 0x392   :  { %1215 = verf.f32 %v716_v62 }
 0x39f   :  { %v1216_v0 = vpop.eup %1215 }
 0x3a0   :  { %v718_v2 = vadd.f32 1.0, %v1216_v0 }
 0x3a2   :  { %v719_v3 = vmul.f32 %v718_v2, %v715_v1 }
 0x3a4   :  { %1141 = vmatmul.mubr.f32.vlgmr.msra.gmra.mxu1 %v719_v3 }
 0x464   :  { %v806_v9 = vpop.f32.mrf.mxu1 }
 0x465   :  { %v807_v17 = vadd.f32 %v926_v7, %v806_v9 }
 0x466   :  { %v1142_v19 = vpop.f32.mrf.mxu1 }
 0x467   :  { %v811_v20 = vmul.f32 0.70710677, %v807_v17  ;;  %v810_v22 = vmul.f32 0.5, %v807_v17 }
 0x469   :  { %1217 = verf.f32 %v811_v20 }
 0x476   :  { %v1218_v21 = vpop.eup %1217 }
 0x477   :  { %v813_v23 = vadd.f32 1.0, %v1218_v21 }
 0x479   :  { %v814_v24 = vmul.f32 %v813_v23, %v810_v22 }
 0x47b   :  { %1176 = vmatmul.mubr.f32.vlgmr.msra.gmra.mxu0 %v814_v24 }
 0x53b   :  { %v901_v35 = vpop.f32.mrf.mxu0 }
 0x53c   :  { %v902_v55 = vadd.f32 %v927_v25, %v901_v35 }
 0x53d   :  { %v1177_v26 = vpop.f32.mrf.mxu0 }
 0x53e   :  { %906 = vst.msk [vmem:[%s1693_s9] sm:$0xff] %vm905_vm1, %v902_v55 }
 0x53f   :  { %911 = vsyncpa [#allocation3], 1 }
 0x540   :  { %912 = vsyncpa [#allocation5], 1 }
 0x541   :  { %913 = vsyncpa [#allocation8], 1 }

</bundles_post_ra>
